<compile_context>
chip_gen: v7x
topology: tpu7x:2x2x1
jax: 0.10.0
libtpu: 0.0.40
codegen_flags: <defaults>
</compile_context>

<pallas_src>
import functools

import jax
import jax.numpy as jnp
from jax import lax
from jax.experimental import pallas as pl
from jax.experimental.pallas import tpu as pltpu


def _dice_sums_kernel(p_ref, l_ref, o_ref, *, n_tiles, tiles_per_split,
                      ragged, d_rem, needs_guard):
    """Accumulate per-class (intersection, sum(probs), sum(target)) partial sums.

    p_ref: (1, C, td, H, W)       probs block (native dtype)
    l_ref: (1, 1, td, H, W)       labels block (native integer dtype, 0 == background)
    o_ref: (1, 1, 3, C, 8, W) f32 resident accumulator / output block
    """
    _, C, td, H, W = p_ref.shape
    t = pl.program_id(2)

    @pl.when(t == 0)
    def _():
        o_ref[...] = jnp.zeros_like(o_ref)

    def _acc(q, c, x):
        # x: (d, H, W) f32.  Reduce with pure vreg (VPU) adds into the resident
        # (8, W) accumulator slice; the final 8xW collapse happens in JAX.
        y = jnp.sum(x, axis=0)                                   # (H, W)
        if H % 8 == 0:
            o_ref[0, 0, q, c] += jnp.sum(y.reshape(H // 8, 8, W), axis=0)
        else:
            # Rare case (H not a multiple of 8): one sublane reduce per call.
            o_ref[0, 0, q, c, 0:1, :] += jnp.sum(y, axis=0, keepdims=True)

    def _accumulate(valid):
        lbl = l_ref[0, 0]                                        # (td, H, W)
        if lbl.dtype != jnp.int32:
            lbl = lbl.astype(jnp.int32)       # widen narrow labels in-register
        if valid is not None:
            lbl = jnp.where(valid, lbl, 0)    # padded D rows -> background
        for c in range(C):
            pc = p_ref[0, c].astype(jnp.float32)                 # (td, H, W)
            m = lbl == (c + 1)                                   # one-hot chan c+1
            _acc(0, c, jnp.where(m, pc, 0.0))                              # num
            _acc(1, c, pc if valid is None else jnp.where(valid, pc, 0.0))  # den1
            _acc(2, c, jnp.where(m, 1.0, 0.0))                             # den2

    if not needs_guard:
        # Fast path: every tile is full and in range (no masks, no branches).
        _accumulate(None)
    else:
        g = pl.program_id(0) * tiles_per_split + t               # global D-tile idx
        full_limit = (n_tiles - 1) if ragged else n_tiles
        if full_limit > 0:
            @pl.when(g < full_limit)
            def _():
                _accumulate(None)                                # unmasked tiles
        if ragged:
            @pl.when(g == n_tiles - 1)
            def _():
                d_idx = lax.broadcasted_iota(jnp.int32, (td, H, W), 0)
                _accumulate(d_idx < d_rem)                       # masked last tile


def dice_loss_multi(probs, target_labels, n_classes, overlap_penalty=False,
                    block_slices=None):
    """JAX/Pallas equivalent of DiceLoss_multi.forward(input, targetLabels, n_classes)."""
    assert probs.ndim == 5, "probs must be (B, C, D, H, W)"
    B, C, D, H, W = probs.shape
    assert C == n_classes
    assert target_labels.shape == (B, 1, D, H, W), \
        "targetLabels must be (B, 1, D, H, W)"

    labels = target_labels
    if not jnp.issubdtype(labels.dtype, jnp.integer):
        labels = labels.astype(jnp.int32)     # only if the caller passed floats

    # Dtype-aware block sizing: ~4 MiB of probs per grid step (clipped to D).
    if block_slices is None:
        slice_bytes = C * H * W * probs.dtype.itemsize
        td = max(1, (4 * 1024 * 1024) // slice_bytes)
    else:
        td = int(block_slices)
    td = int(max(1, min(td, D)))

    n_tiles = -(-D // td)
    ragged = (D % td) != 0
    d_rem = D - (n_tiles - 1) * td            # valid D rows in the last tile
    # Megacore coverage when B == 1: shard the tile range across 2 cores.
    split = 2 if (B == 1 and n_tiles >= 2) else 1
    tiles_per_split = -(-n_tiles // split)
    needs_guard = (split > 1) or ragged

    def dmap(s, t):
        if split == 1:
            return t
        # Clamp overflow tiles of the second half to an in-bounds block; the
        # kernel skips accumulating them.
        return jnp.minimum(s * tiles_per_split + t, n_tiles - 1)

    kernel = functools.partial(
        _dice_sums_kernel, n_tiles=n_tiles, tiles_per_split=tiles_per_split,
        ragged=ragged, d_rem=d_rem, needs_guard=needs_guard)

    sums = pl.pallas_call(
        kernel,
        out_shape=jax.ShapeDtypeStruct((split, B, 3, C, 8, W), jnp.float32),
        grid_spec=pltpu.PrefetchScalarGridSpec(
            num_scalar_prefetch=0,
            grid=(split, B, tiles_per_split),
            in_specs=[
                pl.BlockSpec((1, C, td, H, W),
                             lambda s, b, t: (b, 0, dmap(s, t), 0, 0)),
                pl.BlockSpec((1, 1, td, H, W),
                             lambda s, b, t: (b, 0, dmap(s, t), 0, 0)),
            ],
            out_specs=pl.BlockSpec((1, 1, 3, C, 8, W),
                                   lambda s, b, t: (s, b, 0, 0, 0, 0)),
        ),
        compiler_params=pltpu.CompilerParams(
            dimension_semantics=("parallel", "parallel", "arbitrary"),
            vmem_limit_bytes=48 * 1024 * 1024),
    )(probs, labels)

    sums = jnp.sum(sums, axis=(0, 4, 5))                  # (B, 3, C)
    num, den1, den2 = sums[:, 0], sums[:, 1], sums[:, 2]
    dice = 2.0 * (num / (den1 + den2 + jnp.float32(0.005)))
    loss = jnp.float32(1.0) - jnp.mean(dice)

    if overlap_penalty:
        # TODO(synk): overlap penalty computed in plain JAX (not fused into the
        # Pallas reduction); mirrors the original broadcasting (vector result).
        p32 = probs.astype(jnp.float32)
        overlap = jnp.sum(p32[:, 0] * p32[:, 1], axis=(1, 2, 3))
        overlap_fraction = overlap / (den1[:, 0] + den1[:, 1])
        return loss + overlap_fraction
    return loss


def _reference(probs, labels, n_classes):
    onehot = jax.nn.one_hot(labels[:, 0], n_classes + 1, axis=1)  # (B, C+1, D, H, W)
    target = onehot[:, 1:].astype(jnp.float32)
    pf = probs.astype(jnp.float32)
    num = jnp.sum(pf * target, axis=(2, 3, 4))
    den1 = jnp.sum(pf, axis=(2, 3, 4))
    den2 = jnp.sum(target, axis=(2, 3, 4))
    dice = 2.0 * (num / (den1 + den2 + 0.005))
    return 1.0 - jnp.mean(dice)


if __name__ == "__main__":
    key = jax.random.PRNGKey(0)
    kp, kl = jax.random.split(key)

    # Small (B, C, D, H, W) consistent with the module's NCDHW convention.
    B, n_classes, D, H, W = 2, 3, 5, 16, 16
    logits = jax.random.normal(kp, (B, n_classes, D, H, W), dtype=jnp.float32)
    probs = jax.nn.softmax(logits, axis=1)
    labels_i32 = jax.random.randint(kl, (B, 1, D, H, W), 0, n_classes + 1,
                                    dtype=jnp.int32)
    labels_u8 = labels_i32.astype(jnp.uint8)

    ref = _reference(probs, labels_i32, n_classes)

    # 1) Default (production-sized) block path with narrow uint8 labels.
    out1 = dice_loss_multi(probs, labels_u8, n_classes)
    jax.block_until_ready(out1)
    assert jnp.allclose(out1, ref, atol=1e-5, rtol=1e-5), (out1, ref)

    # 2) Small blocks: multi-tile reduction with a ragged last D tile, int32 labels.
    out2 = dice_loss_multi(probs, labels_i32, n_classes, block_slices=2)
    jax.block_until_ready(out2)
    assert jnp.allclose(out2, ref, atol=1e-5, rtol=1e-5), (out2, ref)

    # 3) B == 1: two-way megacore split (clamped/skipped overflow tile + ragged tail).
    ref1 = _reference(probs[:1], labels_i32[:1], n_classes)
    out3 = dice_loss_multi(probs[:1], labels_u8[:1], n_classes, block_slices=2)
    jax.block_until_ready(out3)
    assert jnp.allclose(out3, ref1, atol=1e-5, rtol=1e-5), (out3, ref1)

    print("KERNEL_OK")
</pallas_src>

<mosaic_0001>
module attributes {stable_mosaic.version = 11 : i64} {
  func.func @_dice_sums_kernel(%arg0: i32, %arg1: i32, %arg2: i32, %arg3: memref<1x3x5x16x16xf32, #tpu.memory_space<vmem>>, %arg4: memref<1x1x5x16x16xi8, #tpu.memory_space<vmem>>, %arg5: memref<1x1x3x3x8x16xf32, #tpu.memory_space<vmem>>) attributes {dimension_semantics = [#tpu.dimension_semantics<parallel>, #tpu.dimension_semantics<parallel>, #tpu.dimension_semantics<arbitrary>], iteration_bounds = array<i64: 1, 2, 1>, scalar_prefetch = 0 : i64, scratch_operands = 0 : i64, tpu.core_type = #tpu.core_type<tc>, window_params = [{transform_indices = @transform_0, window_bounds = array<i64: 1, 3, 5, 16, 16>}, {transform_indices = @transform_1, window_bounds = array<i64: 1, 1, 5, 16, 16>}, {transform_indices = @transform_2, window_bounds = array<i64: 1, 1, 3, 3, 8, 16>}]} {
    %c0_i32 = arith.constant 0 : i32
    %0 = arith.cmpi eq, %arg2, %c0_i32 : i32
    %1 = arith.extui %0 : i1 to i32
    %c0_i32_0 = arith.constant 0 : i32
    %2 = arith.cmpi ne, %1, %c0_i32_0 : i32
    scf.if %2 {
      %cst_152 = arith.constant 0.000000e+00 : f32
      %114 = vector.broadcast %cst_152 : f32 to vector<1x1x3x3x8x16xf32>
      %c0_153 = arith.constant 0 : index
      %c0_154 = arith.constant 0 : index
      %c0_155 = arith.constant 0 : index
      %c0_156 = arith.constant 0 : index
      %c0_157 = arith.constant 0 : index
      %c0_158 = arith.constant 0 : index
      %115 = vector.load %arg5[%c0_153, %c0_154, %c0_155, %c0_156, %c0_157, %c0_158] : memref<1x1x3x3x8x16xf32, #tpu.memory_space<vmem>>, vector<1x1x3x3x8x16xf32>
      tpu.vector_store %arg5[%c0_153, %c0_154, %c0_155, %c0_156, %c0_157, %c0_158], %114 {strides = array<i32>} : memref<1x1x3x3x8x16xf32, #tpu.memory_space<vmem>>, vector<1x1x3x3x8x16xf32>,
    } else {
    }
    %c0 = arith.constant 0 : index
    %c0_1 = arith.constant 0 : index
    %c0_2 = arith.constant 0 : index
    %c0_3 = arith.constant 0 : index
    %c0_4 = arith.constant 0 : index
    %3 = vector.load %arg4[%c0, %c0_1, %c0_2, %c0_3, %c0_4] : memref<1x1x5x16x16xi8, #tpu.memory_space<vmem>>, vector<1x1x5x16x16xi8>
    %4 = vector.shape_cast %3 : vector<1x1x5x16x16xi8> to vector<5x16x16xi8>
    %5 = arith.extui %4 : vector<5x16x16xi8> to vector<5x16x16xi32>
    %c0_5 = arith.constant 0 : index
    %c0_6 = arith.constant 0 : index
    %c0_7 = arith.constant 0 : index
    %c0_8 = arith.constant 0 : index
    %c0_9 = arith.constant 0 : index
    %6 = vector.load %arg3[%c0_5, %c0_6, %c0_7, %c0_8, %c0_9] : memref<1x3x5x16x16xf32, #tpu.memory_space<vmem>>, vector<1x1x5x16x16xf32>
    %7 = vector.shape_cast %6 : vector<1x1x5x16x16xf32> to vector<5x16x16xf32>
    %c1_i32 = arith.constant 1 : i32
    %8 = vector.broadcast %c1_i32 : i32 to vector<5x16x16xi32>
    %9 = arith.cmpi eq, %5, %8 : vector<5x16x16xi32>
    %cst = arith.constant 0.000000e+00 : f32
    %10 = vector.broadcast %cst : f32 to vector<5x16x16xf32>
    %11 = arith.select %9, %7, %10 : vector<5x16x16xi1>, vector<5x16x16xf32>
    %cst_10 = arith.constant dense<0.000000e+00> : vector<16x16xf32>
    %12 = vector.multi_reduction <add>, %11, %cst_10 [0] : vector<5x16x16xf32> to vector<16x16xf32>
    %c0_11 = arith.constant 0 : index
    %c0_12 = arith.constant 0 : index
    %c0_13 = arith.constant 0 : index
    %c0_14 = arith.constant 0 : index
    %c0_15 = arith.constant 0 : index
    %c0_16 = arith.constant 0 : index
    %13 = vector.load %arg5[%c0_11, %c0_12, %c0_13, %c0_14, %c0_15, %c0_16] : memref<1x1x3x3x8x16xf32, #tpu.memory_space<vmem>>, vector<1x1x1x1x8x16xf32>
    %14 = vector.shape_cast %13 : vector<1x1x1x1x8x16xf32> to vector<8x16xf32>
    %15 = vector.shape_cast %12 : vector<16x16xf32> to vector<2x8x16xf32>
    %cst_17 = arith.constant dense<0.000000e+00> : vector<8x16xf32>
    %16 = vector.multi_reduction <add>, %15, %cst_17 [0] : vector<2x8x16xf32> to vector<8x16xf32>
    %17 = arith.addf %14, %16 : vector<8x16xf32>
    %c0_18 = arith.constant 0 : index
    %c0_19 = arith.constant 0 : index
    %c0_20 = arith.constant 0 : index
    %c0_21 = arith.constant 0 : index
    %c0_22 = arith.constant 0 : index
    %c0_23 = arith.constant 0 : index
    %18 = vector.load %arg5[%c0_18, %c0_19, %c0_20, %c0_21, %c0_22, %c0_23] : memref<1x1x3x3x8x16xf32, #tpu.memory_space<vmem>>, vector<1x1x1x1x8x16xf32>
    %19 = vector.shape_cast %18 : vector<1x1x1x1x8x16xf32> to vector<8x16xf32>
    %20 = vector.shape_cast %17 : vector<8x16xf32> to vector<1x1x1x1x8x16xf32>
    tpu.vector_store %arg5[%c0_18, %c0_19, %c0_20, %c0_21, %c0_22, %c0_23], %20 {strides = array<i32>} : memref<1x1x3x3x8x16xf32, #tpu.memory_space<vmem>>, vector<1x1x1x1x8x16xf32>,
    %cst_24 = arith.constant dense<0.000000e+00> : vector<16x16xf32>
    %21 = vector.multi_reduction <add>, %7, %cst_24 [0] : vector<5x16x16xf32> to vector<16x16xf32>
    %c0_25 = arith.constant 0 : index
    %c0_26 = arith.constant 0 : index
    %c1 = arith.constant 1 : index
    %c0_27 = arith.constant 0 : index
    %c0_28 = arith.constant 0 : index
    %c0_29 = arith.constant 0 : index
    %22 = vector.load %arg5[%c0_25, %c0_26, %c1, %c0_27, %c0_28, %c0_29] : memref<1x1x3x3x8x16xf32, #tpu.memory_space<vmem>>, vector<1x1x1x1x8x16xf32>
    %23 = vector.shape_cast %22 : vector<1x1x1x1x8x16xf32> to vector<8x16xf32>
    %24 = vector.shape_cast %21 : vector<16x16xf32> to vector<2x8x16xf32>
    %cst_30 = arith.constant dense<0.000000e+00> : vector<8x16xf32>
    %25 = vector.multi_reduction <add>, %24, %cst_30 [0] : vector<2x8x16xf32> to vector<8x16xf32>
    %26 = arith.addf %23, %25 : vector<8x16xf32>
    %c0_31 = arith.constant 0 : index
    %c0_32 = arith.constant 0 : index
    %c1_33 = arith.constant 1 : index
    %c0_34 = arith.constant 0 : index
    %c0_35 = arith.constant 0 : index
    %c0_36 = arith.constant 0 : index
    %27 = vector.load %arg5[%c0_31, %c0_32, %c1_33, %c0_34, %c0_35, %c0_36] : memref<1x1x3x3x8x16xf32, #tpu.memory_space<vmem>>, vector<1x1x1x1x8x16xf32>
    %28 = vector.shape_cast %27 : vector<1x1x1x1x8x16xf32> to vector<8x16xf32>
    %29 = vector.shape_cast %26 : vector<8x16xf32> to vector<1x1x1x1x8x16xf32>
    tpu.vector_store %arg5[%c0_31, %c0_32, %c1_33, %c0_34, %c0_35, %c0_36], %29 {strides = array<i32>} : memref<1x1x3x3x8x16xf32, #tpu.memory_space<vmem>>, vector<1x1x1x1x8x16xf32>,
    %cst_37 = arith.constant 1.000000e+00 : f32
    %cst_38 = arith.constant 0.000000e+00 : f32
    %30 = vector.broadcast %cst_37 : f32 to vector<5x16x16xf32>
    %31 = vector.broadcast %cst_38 : f32 to vector<5x16x16xf32>
    %32 = arith.select %9, %30, %31 : vector<5x16x16xi1>, vector<5x16x16xf32>
    %cst_39 = arith.constant dense<0.000000e+00> : vector<16x16xf32>
    %33 = vector.multi_reduction <add>, %32, %cst_39 [0] : vector<5x16x16xf32> to vector<16x16xf32>
    %c0_40 = arith.constant 0 : index
    %c0_41 = arith.constant 0 : index
    %c2 = arith.constant 2 : index
    %c0_42 = arith.constant 0 : index
    %c0_43 = arith.constant 0 : index
    %c0_44 = arith.constant 0 : index
    %34 = vector.load %arg5[%c0_40, %c0_41, %c2, %c0_42, %c0_43, %c0_44] : memref<1x1x3x3x8x16xf32, #tpu.memory_space<vmem>>, vector<1x1x1x1x8x16xf32>
    %35 = vector.shape_cast %34 : vector<1x1x1x1x8x16xf32> to vector<8x16xf32>
    %36 = vector.shape_cast %33 : vector<16x16xf32> to vector<2x8x16xf32>
    %cst_45 = arith.constant dense<0.000000e+00> : vector<8x16xf32>
    %37 = vector.multi_reduction <add>, %36, %cst_45 [0] : vector<2x8x16xf32> to vector<8x16xf32>
    %38 = arith.addf %35, %37 : vector<8x16xf32>
    %c0_46 = arith.constant 0 : index
    %c0_47 = arith.constant 0 : index
    %c2_48 = arith.constant 2 : index
    %c0_49 = arith.constant 0 : index
    %c0_50 = arith.constant 0 : index
    %c0_51 = arith.constant 0 : index
    %39 = vector.load %arg5[%c0_46, %c0_47, %c2_48, %c0_49, %c0_50, %c0_51] : memref<1x1x3x3x8x16xf32, #tpu.memory_space<vmem>>, vector<1x1x1x1x8x16xf32>
    %40 = vector.shape_cast %39 : vector<1x1x1x1x8x16xf32> to vector<8x16xf32>
    %41 = vector.shape_cast %38 : vector<8x16xf32> to vector<1x1x1x1x8x16xf32>
    tpu.vector_store %arg5[%c0_46, %c0_47, %c2_48, %c0_49, %c0_50, %c0_51], %41 {strides = array<i32>} : memref<1x1x3x3x8x16xf32, #tpu.memory_space<vmem>>, vector<1x1x1x1x8x16xf32>,
    %c0_52 = arith.constant 0 : index
    %c1_53 = arith.constant 1 : index
    %c0_54 = arith.constant 0 : index
    %c0_55 = arith.constant 0 : index
    %c0_56 = arith.constant 0 : index
    %42 = vector.load %arg3[%c0_52, %c1_53, %c0_54, %c0_55, %c0_56] : memref<1x3x5x16x16xf32, #tpu.memory_space<vmem>>, vector<1x1x5x16x16xf32>
    %43 = vector.shape_cast %42 : vector<1x1x5x16x16xf32> to vector<5x16x16xf32>
    %c2_i32 = arith.constant 2 : i32
    %44 = vector.broadcast %c2_i32 : i32 to vector<5x16x16xi32>
    %45 = arith.cmpi eq, %5, %44 : vector<5x16x16xi32>
    %cst_57 = arith.constant 0.000000e+00 : f32
    %46 = vector.broadcast %cst_57 : f32 to vector<5x16x16xf32>
    %47 = arith.select %45, %43, %46 : vector<5x16x16xi1>, vector<5x16x16xf32>
    %cst_58 = arith.constant dense<0.000000e+00> : vector<16x16xf32>
    %48 = vector.multi_reduction <add>, %47, %cst_58 [0] : vector<5x16x16xf32> to vector<16x16xf32>
    %c0_59 = arith.constant 0 : index
    %c0_60 = arith.constant 0 : index
    %c0_61 = arith.constant 0 : index
    %c1_62 = arith.constant 1 : index
    %c0_63 = arith.constant 0 : index
    %c0_64 = arith.constant 0 : index
    %49 = vector.load %arg5[%c0_59, %c0_60, %c0_61, %c1_62, %c0_63, %c0_64] : memref<1x1x3x3x8x16xf32, #tpu.memory_space<vmem>>, vector<1x1x1x1x8x16xf32>
    %50 = vector.shape_cast %49 : vector<1x1x1x1x8x16xf32> to vector<8x16xf32>
    %51 = vector.shape_cast %48 : vector<16x16xf32> to vector<2x8x16xf32>
    %cst_65 = arith.constant dense<0.000000e+00> : vector<8x16xf32>
    %52 = vector.multi_reduction <add>, %51, %cst_65 [0] : vector<2x8x16xf32> to vector<8x16xf32>
    %53 = arith.addf %50, %52 : vector<8x16xf32>
    %c0_66 = arith.constant 0 : index
    %c0_67 = arith.constant 0 : index
    %c0_68 = arith.constant 0 : index
    %c1_69 = arith.constant 1 : index
    %c0_70 = arith.constant 0 : index
    %c0_71 = arith.constant 0 : index
    %54 = vector.load %arg5[%c0_66, %c0_67, %c0_68, %c1_69, %c0_70, %c0_71] : memref<1x1x3x3x8x16xf32, #tpu.memory_space<vmem>>, vector<1x1x1x1x8x16xf32>
    %55 = vector.shape_cast %54 : vector<1x1x1x1x8x16xf32> to vector<8x16xf32>
    %56 = vector.shape_cast %53 : vector<8x16xf32> to vector<1x1x1x1x8x16xf32>
    tpu.vector_store %arg5[%c0_66, %c0_67, %c0_68, %c1_69, %c0_70, %c0_71], %56 {strides = array<i32>} : memref<1x1x3x3x8x16xf32, #tpu.memory_space<vmem>>, vector<1x1x1x1x8x16xf32>,
    %cst_72 = arith.constant dense<0.000000e+00> : vector<16x16xf32>
    %57 = vector.multi_reduction <add>, %43, %cst_72 [0] : vector<5x16x16xf32> to vector<16x16xf32>
    %c0_73 = arith.constant 0 : index
    %c0_74 = arith.constant 0 : index
    %c1_75 = arith.constant 1 : index
    %c1_76 = arith.constant 1 : index
    %c0_77 = arith.constant 0 : index
    %c0_78 = arith.constant 0 : index
    %58 = vector.load %arg5[%c0_73, %c0_74, %c1_75, %c1_76, %c0_77, %c0_78] : memref<1x1x3x3x8x16xf32, #tpu.memory_space<vmem>>, vector<1x1x1x1x8x16xf32>
    %59 = vector.shape_cast %58 : vector<1x1x1x1x8x16xf32> to vector<8x16xf32>
    %60 = vector.shape_cast %57 : vector<16x16xf32> to vector<2x8x16xf32>
    %cst_79 = arith.constant dense<0.000000e+00> : vector<8x16xf32>
    %61 = vector.multi_reduction <add>, %60, %cst_79 [0] : vector<2x8x16xf32> to vector<8x16xf32>
    %62 = arith.addf %59, %61 : vector<8x16xf32>
    %c0_80 = arith.constant 0 : index
    %c0_81 = arith.constant 0 : index
    %c1_82 = arith.constant 1 : index
    %c1_83 = arith.constant 1 : index
    %c0_84 = arith.constant 0 : index
    %c0_85 = arith.constant 0 : index
    %63 = vector.load %arg5[%c0_80, %c0_81, %c1_82, %c1_83, %c0_84, %c0_85] : memref<1x1x3x3x8x16xf32, #tpu.memory_space<vmem>>, vector<1x1x1x1x8x16xf32>
    %64 = vector.shape_cast %63 : vector<1x1x1x1x8x16xf32> to vector<8x16xf32>
    %65 = vector.shape_cast %62 : vector<8x16xf32> to vector<1x1x1x1x8x16xf32>
    tpu.vector_store %arg5[%c0_80, %c0_81, %c1_82, %c1_83, %c0_84, %c0_85], %65 {strides = array<i32>} : memref<1x1x3x3x8x16xf32, #tpu.memory_space<vmem>>, vector<1x1x1x1x8x16xf32>,
    %cst_86 = arith.constant 1.000000e+00 : f32
    %cst_87 = arith.constant 0.000000e+00 : f32
    %66 = vector.broadcast %cst_86 : f32 to vector<5x16x16xf32>
    %67 = vector.broadcast %cst_87 : f32 to vector<5x16x16xf32>
    %68 = arith.select %45, %66, %67 : vector<5x16x16xi1>, vector<5x16x16xf32>
    %cst_88 = arith.constant dense<0.000000e+00> : vector<16x16xf32>
    %69 = vector.multi_reduction <add>, %68, %cst_88 [0] : vector<5x16x16xf32> to vector<16x16xf32>
    %c0_89 = arith.constant 0 : index
    %c0_90 = arith.constant 0 : index
    %c2_91 = arith.constant 2 : index
    %c1_92 = arith.constant 1 : index
    %c0_93 = arith.constant 0 : index
    %c0_94 = arith.constant 0 : index
    %70 = vector.load %arg5[%c0_89, %c0_90, %c2_91, %c1_92, %c0_93, %c0_94] : memref<1x1x3x3x8x16xf32, #tpu.memory_space<vmem>>, vector<1x1x1x1x8x16xf32>
    %71 = vector.shape_cast %70 : vector<1x1x1x1x8x16xf32> to vector<8x16xf32>
    %72 = vector.shape_cast %69 : vector<16x16xf32> to vector<2x8x16xf32>
    %cst_95 = arith.constant dense<0.000000e+00> : vector<8x16xf32>
    %73 = vector.multi_reduction <add>, %72, %cst_95 [0] : vector<2x8x16xf32> to vector<8x16xf32>
    %74 = arith.addf %71, %73 : vector<8x16xf32>
    %c0_96 = arith.constant 0 : index
    %c0_97 = arith.constant 0 : index
    %c2_98 = arith.constant 2 : index
    %c1_99 = arith.constant 1 : index
    %c0_100 = arith.constant 0 : index
    %c0_101 = arith.constant 0 : index
    %75 = vector.load %arg5[%c0_96, %c0_97, %c2_98, %c1_99, %c0_100, %c0_101] : memref<1x1x3x3x8x16xf32, #tpu.memory_space<vmem>>, vector<1x1x1x1x8x16xf32>
    %76 = vector.shape_cast %75 : vector<1x1x1x1x8x16xf32> to vector<8x16xf32>
    %77 = vector.shape_cast %74 : vector<8x16xf32> to vector<1x1x1x1x8x16xf32>
    tpu.vector_store %arg5[%c0_96, %c0_97, %c2_98, %c1_99, %c0_100, %c0_101], %77 {strides = array<i32>} : memref<1x1x3x3x8x16xf32, #tpu.memory_space<vmem>>, vector<1x1x1x1x8x16xf32>,
    %c0_102 = arith.constant 0 : index
    %c2_103 = arith.constant 2 : index
    %c0_104 = arith.constant 0 : index
    %c0_105 = arith.constant 0 : index
    %c0_106 = arith.constant 0 : index
    %78 = vector.load %arg3[%c0_102, %c2_103, %c0_104, %c0_105, %c0_106] : memref<1x3x5x16x16xf32, #tpu.memory_space<vmem>>, vector<1x1x5x16x16xf32>
    %79 = vector.shape_cast %78 : vector<1x1x5x16x16xf32> to vector<5x16x16xf32>
    %c3_i32 = arith.constant 3 : i32
    %80 = vector.broadcast %c3_i32 : i32 to vector<5x16x16xi32>
    %81 = arith.cmpi eq, %5, %80 : vector<5x16x16xi32>
    %cst_107 = arith.constant 0.000000e+00 : f32
    %82 = vector.broadcast %cst_107 : f32 to vector<5x16x16xf32>
    %83 = arith.select %81, %79, %82 : vector<5x16x16xi1>, vector<5x16x16xf32>
    %cst_108 = arith.constant dense<0.000000e+00> : vector<16x16xf32>
    %84 = vector.multi_reduction <add>, %83, %cst_108 [0] : vector<5x16x16xf32> to vector<16x16xf32>
    %c0_109 = arith.constant 0 : index
    %c0_110 = arith.constant 0 : index
    %c0_111 = arith.constant 0 : index
    %c2_112 = arith.constant 2 : index
    %c0_113 = arith.constant 0 : index
    %c0_114 = arith.constant 0 : index
    %85 = vector.load %arg5[%c0_109, %c0_110, %c0_111, %c2_112, %c0_113, %c0_114] : memref<1x1x3x3x8x16xf32, #tpu.memory_space<vmem>>, vector<1x1x1x1x8x16xf32>
    %86 = vector.shape_cast %85 : vector<1x1x1x1x8x16xf32> to vector<8x16xf32>
    %87 = vector.shape_cast %84 : vector<16x16xf32> to vector<2x8x16xf32>
    %cst_115 = arith.constant dense<0.000000e+00> : vector<8x16xf32>
    %88 = vector.multi_reduction <add>, %87, %cst_115 [0] : vector<2x8x16xf32> to vector<8x16xf32>
    %89 = arith.addf %86, %88 : vector<8x16xf32>
    %c0_116 = arith.constant 0 : index
    %c0_117 = arith.constant 0 : index
    %c0_118 = arith.constant 0 : index
    %c2_119 = arith.constant 2 : index
    %c0_120 = arith.constant 0 : index
    %c0_121 = arith.constant 0 : index
    %90 = vector.load %arg5[%c0_116, %c0_117, %c0_118, %c2_119, %c0_120, %c0_121] : memref<1x1x3x3x8x16xf32, #tpu.memory_space<vmem>>, vector<1x1x1x1x8x16xf32>
    %91 = vector.shape_cast %90 : vector<1x1x1x1x8x16xf32> to vector<8x16xf32>
    %92 = vector.shape_cast %89 : vector<8x16xf32> to vector<1x1x1x1x8x16xf32>
    tpu.vector_store %arg5[%c0_116, %c0_117, %c0_118, %c2_119, %c0_120, %c0_121], %92 {strides = array<i32>} : memref<1x1x3x3x8x16xf32, #tpu.memory_space<vmem>>, vector<1x1x1x1x8x16xf32>,
    %cst_122 = arith.constant dense<0.000000e+00> : vector<16x16xf32>
    %93 = vector.multi_reduction <add>, %79, %cst_122 [0] : vector<5x16x16xf32> to vector<16x16xf32>
    %c0_123 = arith.constant 0 : index
    %c0_124 = arith.constant 0 : index
    %c1_125 = arith.constant 1 : index
    %c2_126 = arith.constant 2 : index
    %c0_127 = arith.constant 0 : index
    %c0_128 = arith.constant 0 : index
    %94 = vector.load %arg5[%c0_123, %c0_124, %c1_125, %c2_126, %c0_127, %c0_128] : memref<1x1x3x3x8x16xf32, #tpu.memory_space<vmem>>, vector<1x1x1x1x8x16xf32>
    %95 = vector.shape_cast %94 : vector<1x1x1x1x8x16xf32> to vector<8x16xf32>
    %96 = vector.shape_cast %93 : vector<16x16xf32> to vector<2x8x16xf32>
    %cst_129 = arith.constant dense<0.000000e+00> : vector<8x16xf32>
    %97 = vector.multi_reduction <add>, %96, %cst_129 [0] : vector<2x8x16xf32> to vector<8x16xf32>
    %98 = arith.addf %95, %97 : vector<8x16xf32>
    %c0_130 = arith.constant 0 : index
    %c0_131 = arith.constant 0 : index
    %c1_132 = arith.constant 1 : index
    %c2_133 = arith.constant 2 : index
    %c0_134 = arith.constant 0 : index
    %c0_135 = arith.constant 0 : index
    %99 = vector.load %arg5[%c0_130, %c0_131, %c1_132, %c2_133, %c0_134, %c0_135] : memref<1x1x3x3x8x16xf32, #tpu.memory_space<vmem>>, vector<1x1x1x1x8x16xf32>
    %100 = vector.shape_cast %99 : vector<1x1x1x1x8x16xf32> to vector<8x16xf32>
    %101 = vector.shape_cast %98 : vector<8x16xf32> to vector<1x1x1x1x8x16xf32>
    tpu.vector_store %arg5[%c0_130, %c0_131, %c1_132, %c2_133, %c0_134, %c0_135], %101 {strides = array<i32>} : memref<1x1x3x3x8x16xf32, #tpu.memory_space<vmem>>, vector<1x1x1x1x8x16xf32>,
    %cst_136 = arith.constant 1.000000e+00 : f32
    %cst_137 = arith.constant 0.000000e+00 : f32
    %102 = vector.broadcast %cst_136 : f32 to vector<5x16x16xf32>
    %103 = vector.broadcast %cst_137 : f32 to vector<5x16x16xf32>
    %104 = arith.select %81, %102, %103 : vector<5x16x16xi1>, vector<5x16x16xf32>
    %cst_138 = arith.constant dense<0.000000e+00> : vector<16x16xf32>
    %105 = vector.multi_reduction <add>, %104, %cst_138 [0] : vector<5x16x16xf32> to vector<16x16xf32>
    %c0_139 = arith.constant 0 : index
    %c0_140 = arith.constant 0 : index
    %c2_141 = arith.constant 2 : index
    %c2_142 = arith.constant 2 : index
    %c0_143 = arith.constant 0 : index
    %c0_144 = arith.constant 0 : index
    %106 = vector.load %arg5[%c0_139, %c0_140, %c2_141, %c2_142, %c0_143, %c0_144] : memref<1x1x3x3x8x16xf32, #tpu.memory_space<vmem>>, vector<1x1x1x1x8x16xf32>
    %107 = vector.shape_cast %106 : vector<1x1x1x1x8x16xf32> to vector<8x16xf32>
    %108 = vector.shape_cast %105 : vector<16x16xf32> to vector<2x8x16xf32>
    %cst_145 = arith.constant dense<0.000000e+00> : vector<8x16xf32>
    %109 = vector.multi_reduction <add>, %108, %cst_145 [0] : vector<2x8x16xf32> to vector<8x16xf32>
    %110 = arith.addf %107, %109 : vector<8x16xf32>
    %c0_146 = arith.constant 0 : index
    %c0_147 = arith.constant 0 : index
    %c2_148 = arith.constant 2 : index
    %c2_149 = arith.constant 2 : index
    %c0_150 = arith.constant 0 : index
    %c0_151 = arith.constant 0 : index
    %111 = vector.load %arg5[%c0_146, %c0_147, %c2_148, %c2_149, %c0_150, %c0_151] : memref<1x1x3x3x8x16xf32, #tpu.memory_space<vmem>>, vector<1x1x1x1x8x16xf32>
    %112 = vector.shape_cast %111 : vector<1x1x1x1x8x16xf32> to vector<8x16xf32>
    %113 = vector.shape_cast %110 : vector<8x16xf32> to vector<1x1x1x1x8x16xf32>
    tpu.vector_store %arg5[%c0_146, %c0_147, %c2_148, %c2_149, %c0_150, %c0_151], %113 {strides = array<i32>} : memref<1x1x3x3x8x16xf32, #tpu.memory_space<vmem>>, vector<1x1x1x1x8x16xf32>,
    return
  }
  func.func @transform_0(%arg0: i32, %arg1: i32, %arg2: i32) -> (i32, i32, i32, i32, i32) {
    %c0_i32 = arith.constant 0 : i32
    %c0_i32_0 = arith.constant 0 : i32
    %c0_i32_1 = arith.constant 0 : i32
    %c0_i32_2 = arith.constant 0 : i32
    return %arg1, %c0_i32, %arg2, %c0_i32_0, %c0_i32_1 : i32, i32, i32, i32, i32
  }
  func.func @transform_1(%arg0: i32, %arg1: i32, %arg2: i32) -> (i32, i32, i32, i32, i32) {
    %c0_i32 = arith.constant 0 : i32
    %c0_i32_0 = arith.constant 0 : i32
    %c0_i32_1 = arith.constant 0 : i32
    %c0_i32_2 = arith.constant 0 : i32
    return %arg1, %c0_i32, %arg2, %c0_i32_0, %c0_i32_1 : i32, i32, i32, i32, i32
  }
  func.func @transform_2(%arg0: i32, %arg1: i32, %arg2: i32) -> (i32, i32, i32, i32, i32, i32) {
    %c0_i32 = arith.constant 0 : i32
    %c0_i32_0 = arith.constant 0 : i32
    %c0_i32_1 = arith.constant 0 : i32
    %c0_i32_2 = arith.constant 0 : i32
    %c0_i32_3 = arith.constant 0 : i32
    return %arg0, %arg1, %c0_i32, %c0_i32_0, %c0_i32_1, %c0_i32_2 : i32, i32, i32, i32, i32, i32
  }
}

</mosaic_0001>

<bundles_post_ra>
// kernel: tpu_custom_call.1
= control target key start
LH: loop header
LB: loop body
LE: loop exit
PB: predicated region body
PF: predicated region fallthrough
CT: control target
= control target key end

     0   :  { %7 = vsyncpa [#allocation3], 0  ;;  %s1706_s0 = inlined_call_operand.hbm [shape: f32[2,3,5,16,16], index: 0, kind: input, shape index: {}]   ;;  %s1707_s1 = inlined_call_operand.hbm [shape: u8[2,1,5,16,16], index: 1, kind: input, shape index: {}]   ;;  %s1708_s2 = inlined_call_operand.hbm [shape: f32[1,2,3,3,8,16], index: 2, kind: output, shape index: {}]  }
   0x1   :  { %9 = vsyncpa [#allocation3 + $0x1], 0 }
   0x2   :  { %10 = vsyncpa [#allocation6], 0 }
   0x3   :  { %12 = vsyncpa [#allocation6 + $0x1], 0 }
   0x4   :  { %13 = vsyncpa [#allocation4], 0 }
   0x5   :  { %15 = vsyncpa [#allocation4 + $0x1], 0  ;;  %s1083_s9 = smov 0   ;;  %s1085_s10 = smov 0  }
   0x6   :  { %s1087_s11 = smov 0   ;;  %s1089_s12 = smov 0  }
   0x7   :  { %s1091_s13 = smov 0   ;;  %s1093_s14 = smov 0  }
   0x8 LB: > { %s758_s15 = sadd.s32 4294967295, %s1056_s14   ;;  %s759_s16 = sadd.s32 4294967294, %s1056_s14   ;;  %s1056_s14 = sphi %s1093_s14, %s21_s14   ;;  %s1052_s13 = sphi %s1091_s13, %s1726_s13   ;;  %s1048_s12 = sphi %s1089_s12, %s1725_s12   ;;  %s1044_s11 = sphi %s1087_s11, %s1724_s11   ;;  %s1040_s10 = sphi %s1085_s10, %s1723_s10   ;;  %s1036_s9 = sphi %s1083_s9, %s1722_s9  }
   0x9   : > { %s36_s17 = sadd.s32 1, %s1052_s13  ;;  %s49_s18 = sadd.s32 1, %s1044_s11 }
   0xa   : > { %p38_p0 = scmp.ge.s32.totalorder %s36_s17, 2  ;;  %p56_p1 = scmp.ne.s32.totalorder %s1044_s11, %s1040_s10 }
   0xb   : > { %p57_p2 = scmp.eq.s32.totalorder %s1056_s14, 0  ;;  %p62_p3 = scmp.ne.s32.totalorder %s1040_s10, %s1036_s9 }
   0xc   : > { %s1728_s17 = smov (%p38_p0, %s36_s17), 0  ;;  %p63_p5 = scmp.eq.s32.totalorder %s758_s15, 0 }
   0xd   : > { %p1124_p4 = por %p57_p2, %p56_p1  ;;  %s44_s20 = ssub.s32 %s1052_s13, %s1728_s17 }
   0xe   : > { %p116_p6 = scmp.eq.s32.totalorder %s758_s15, 1  ;;  %p47_p7 = scmp.eq.s32.totalorder %s44_s20, 0 }
   0xf   : > { %p1130_p8 = por %p63_p5, %p62_p3  ;;  %p122_p10 = scmp.eq.s32.totalorder %s759_s16, 1 }
  0x10   : > { %p1134_p9 = por %p116_p6, %p56_p1  ;;  %p853_p13 = scmp.lt.s32.totalorder %s1056_s14, 2 }
  0x11   : > { %s1712_s21 = scalar_select %p1130_p8, 1, 0 }
  0x12   : > { %s1713_s22 = scalar_select %p1134_p9, 1, 0 }
  0x13   : > { %s1139_s23 = scalar_select %p47_p7, %s1044_s11, %s49_s18  }
  0x14   : > { %p1141_p11 = por %p122_p10, %p62_p3  ;;  %s1148_s25 = sand.u32 1, %s1044_s11  }
  0x15   : > { %s828_s26 = smul.u32 240, %s1148_s25  ;;  %p1154_p0 = pnand %p853_p13, %p1124_p4 }
  0x16   : > { %s1714_s24 = scalar_select %p1141_p11, 1, 0 }
  0x17   : > { %s829_s27 = smul.u32 3840, %s1052_s13  ;;  %s146_s4 = scalar_lea.vmem [#allocation2], %s828_s26 }
  0x18   : > { %s156_s5 = sshll.u32 %s146_s4, 4  ;;  %s143_s6 = scalar_lea.sflag [#allocation3], %s1148_s25  ;;  %s1163_s5 = int_to_ptr.vmem [resolvable:$true] %s156_s5 }
  0x19   : > { %s1161_s3 = scalar_lea.hbm %s1706_s0, %s829_s27  ;;  %p912_p3 = pneg %p1154_p0 }
  0x1a   : > { %s910_s7 = scalar_lea.hbm %s1161_s3, 3840  ;;  %s915_s16 = scalar_lea.hbm %s1706_s0, 7680 }
  0x1b   : > { %p911_p2 = scmp.ne.s32.totalorder %s1161_s3, %s910_s7  ;;  %p916_p6 = scmp.lt.u32.totalorder %s1161_s3, %s1706_s0 }
  0x1c   : > { %p917_p7 = scmp.lt.u32.totalorder %s915_s16, %s910_s7  ;;  %p919_p13 = scmp.lt.u32.totalorder %s910_s7, %s1161_s3 }
  0x1d   : > { %p913_p4 = pnand %p912_p3, %p911_p2 }
  0x1e   : > { %p918_p10 = por %p917_p7, %p916_p6 }
  0x1f   : > { %p914_p5 = pneg %p913_p4 }
  0x20   : > { %p920_p12 = por %p919_p13, %p918_p10 }
  0x22   : > { %p921_p1 = pnand %p920_p12, %p914_p5 }
  0x24   : > { %924 = shalt.err (!%p921_p1)
}
  0x25   : > { %s925_s20 = scalar_lea.vmem %s1163_s5, 3840  ;;  %s1058_s26 = smov [#allocation2]  }
  0x26   : > { %p926_p2 = scmp.ne.s32.totalorder %s1163_s5, %s925_s20  ;;  %s930_s27 = sshll.u32 %s1058_s26, 4  ;;  %s931_s27 = int_to_ptr.vmem [resolvable:$false] %s930_s27 }
  0x27   : > { %s932_s29 = scalar_lea.vmem %s931_s27, 7680  ;;  %p933_p9 = scmp.lt.s32.totalorder %s1163_s5, %s931_s27 }
  0x28   : > { %p928_p4 = pnand %p926_p2, %p912_p3  ;;  %p934_p6 = scmp.lt.s32.totalorder %s932_s29, %s925_s20 }
  0x2a   : > { %p929_p11 = pneg %p928_p4  ;;  %p935_p7 = por %p934_p6, %p933_p9 }
  0x2c   : > { %p936_p10 = pnand %p935_p7, %p929_p11 }
  0x2e   : > { %939 = shalt.err (!%p936_p10)
}
  0x2f   : > { %s1059_s30 = smov 128   ;;  %s1060_s4 = smov 8  }
  0x30   : > { %845 = dma.hbm_to_vmem [thread:$0]  (!%p1154_p0), %s1161_s3, 3840, %s1163_s5, %s143_s6, %s1059_s30, %s1059_s30, %s1060_s4  }
  0x31   : > { %p188_p12 = scmp.lt.s32.totalorder %s1056_s14, 3  ;;  %s830_s7 = smul.u32 20, %s1148_s25 }
  0x32   : > { %p1716_p9 = scmp.ge.s32.totalorder %s1056_s14, 1  ;;  %s831_s15 = smul.u32 320, %s1052_s13 }
  0x33   : > { %s170_s20 = scalar_lea.vmem [#allocation5], %s830_s7  ;;  %s167_s3 = scalar_lea.sflag [#allocation6], %s1148_s25 }
  0x34   : > { %p1198_p11 = pnand %p1716_p9, %p188_p12  ;;  %s1206_s19 = scalar_lea.hbm %s1707_s1, %s831_s15 }
  0x35   : > { %s180_s26 = sshll.u32 %s170_s20, 4  ;;  %s940_s5 = scalar_lea.hbm %s1206_s19, 320  ;;  %s1208_s26 = int_to_ptr.vmem [resolvable:$true] %s180_s26 }
  0x36   : > { %p941_p1 = scmp.ne.s32.totalorder %s1206_s19, %s940_s5  ;;  %s945_s29 = scalar_lea.hbm %s1707_s1, 640 }
  0x37   : > { %p946_p2 = scmp.lt.u32.totalorder %s1206_s19, %s1707_s1  ;;  %p947_p4 = scmp.lt.u32.totalorder %s945_s29, %s940_s5 }
  0x38   : > { %p943_p5 = pnand %p941_p1, %p912_p3  ;;  %p949_p7 = scmp.lt.u32.totalorder %s940_s5, %s1206_s19 }
  0x39   : > { %p948_p6 = por %p947_p4, %p946_p2 }
  0x3a   : > { %p944_p13 = pneg %p943_p5 }
  0x3b   : > { %p950_p10 = por %p949_p7, %p948_p6 }
  0x3d   : > { %p951_p12 = pnand %p950_p10, %p944_p13 }
  0x3f   : > { %954 = shalt.err (!%p951_p12)
}
  0x40   : > { %s955_s7 = scalar_lea.vmem %s1208_s26, 320  ;;  %s1061_s15 = smov [#allocation5]  }
  0x41   : > { %p956_p9 = scmp.ne.s32.totalorder %s1208_s26, %s955_s7  ;;  %s960_s16 = sshll.u32 %s1061_s15, 4  ;;  %s961_s16 = int_to_ptr.vmem [resolvable:$false] %s960_s16 }
  0x42   : > { %s962_s18 = scalar_lea.vmem %s961_s16, 640  ;;  %p963_p8 = scmp.lt.s32.totalorder %s1208_s26, %s961_s16 }
  0x43   : > { %p958_p1 = pnand %p956_p9, %p912_p3  ;;  %p964_p2 = scmp.lt.s32.totalorder %s962_s18, %s955_s7 }
  0x45   : > { %p959_p5 = pneg %p958_p1  ;;  %p965_p4 = por %p964_p2, %p963_p8 }
  0x47   : > { %p966_p6 = pnand %p965_p4, %p959_p5 }
  0x49   : > { %969 = shalt.err (!%p966_p6)
}
  0x4a   : > { %s1062_s20 = smov 32   ;;  %s1063_s5 = smov 2  }
  0x4b   : > { %848 = dma.hbm_to_vmem [thread:$0]  (!%p1154_p0), %s1206_s19, 320, %s1208_s26, %s167_s3, %s1062_s20, %s1062_s20, %s1063_s5  }
  0x4c   : > { %192 = sbr.rel (%p1198_p11) target bundleno = 190 (0xbe), region = 28  ;;  %s1239_s6 = sand.u32 (!%p1198_p11), 1, %s1040_s10  }
  0x4d   : > { %s832_s27 = smul.u32 (!%p1198_p11), 240, %s1239_s6  ;;  %s195_s29 = scalar_lea.sflag (!%p1198_p11), [#allocation3], %s1239_s6 }
  0x4e   : > { %p1718_p8 = scmp.ne.s32.totalorder (!%p1198_p11), %s1712_s21, 0 }
  0x4f   : > { %s1243_s30 = scalar_lea.vmem (!%p1198_p11), [#allocation2], %s832_s27 }
  0x53   : > { %1023 = dma.done.wait (%p1718_p8), %s195_s29, 3840  }
  0x54   : > { %1025 = vsyncadd (%p1718_p8), %s195_s29, 4294963456  ;;  %s833_s25 = smul.u32 20, %s1239_s6  ;;  %s204_s28 = scalar_lea.sflag [#allocation6], %s1239_s6 }
  0x56   : > { %s207_s8 = scalar_lea.vmem [#allocation5], %s833_s25 }
  0x57   : > { %1027 = dma.done.wait (%p1718_p8), %s204_s28, 320  }
  0x58   : > { %1029 = vsyncadd (%p1718_p8), %s204_s28, 4294966976  ;;  %s834_s19 = smul.u32 72, %s1239_s6  ;;  %vm239_vm0 = vcmask 130048   ;;  %v1064_v0 = vmov 0.0   ;;  %v805_v1 = vld [vmem:[%s207_s8] sm:$0xff]   ;;  %v825_v2 = vld [vmem:[%s207_s8 + $0x8] sm:$0xff]  }
  0x59   : > { %v827_v3 = vld [vmem:[%s207_s8 + $0x10] sm:$0xf]   ;;  %v806_v4 = vunpack.c.0.s8 %v805_v1  ;;  %v807_v5 = vunpack.c.1.s8 %v805_v1  ;;  %v810_v6 = vunpack.c.2.s8 %v805_v1  ;;  %v811_v7 = vunpack.c.3.s8 %v805_v1  ;;  %v279_v16 = vld [vmem:[%s1243_s30] sm:$0xff]  ;;  %v280_v21 = vld [vmem:[%s1243_s30 + $0x8] sm:$0xff]  ;;  %s835_s21 = smul.u32 1152, %s1048_s12  ;;  %s627_s16 = scalar_lea.sflag [#allocation4], %s1239_s6 }
  0x5a   : > { %s1256_s26 = scalar_lea.vmem [#allocation7], %s834_s19  ;;  %v814_v8 = vunpack.c.0.s8 %v825_v2  ;;  %v815_v9 = vunpack.c.1.s8 %v825_v2  ;;  %v818_v10 = vunpack.c.2.s8 %v825_v2  ;;  %v819_v11 = vunpack.c.3.s8 %v825_v2  ;;  %v281_v22 = vld [vmem:[%s1243_s30 + $0x10] sm:$0xff]  ;;  %v282_v27 = vld [vmem:[%s1243_s30 + $0x18] sm:$0xff]  ;;  %v283_v28 = vld [vmem:[%s1243_s30 + $0x20] sm:$0xff]  ;;  %p1719_p3 = scmp.ne.s32.totalorder %s1713_s22, 0 }
  0x5b   : > { %240 = vst.msk [vmem:[%s1256_s26] sm:$0xff] %vm239_vm0, %v1064_v0  ;;  %241 = vst.msk [vmem:[%s1256_s26 + $0x8] sm:$0xff] %vm239_vm0, %v1064_v0  ;;  %v822_v12 = vunpack.c.0.s8 %v827_v3  ;;  %v823_v13 = vunpack.c.1.s8 %v827_v3  ;;  %v1285_v14 = vand.u32 255, %v806_v4  ;;  %v1287_v15 = vand.u32 255, %v807_v5  ;;  %v284_v29 = vld [vmem:[%s1243_s30 + $0x28] sm:$0xff]  ;;  %v285_v30 = vld [vmem:[%s1243_s30 + $0x30] sm:$0xff]  ;;  %s1653_s15 = scalar_lea.hbm %s1708_s2, %s835_s21 }
  0x5c   : > { %242 = vst.msk [vmem:[%s1256_s26 + $0x10] sm:$0xff] %vm239_vm0, %v1064_v0  ;;  %243 = vst.msk [vmem:[%s1256_s26 + $0x18] sm:$0xff] %vm239_vm0, %v1064_v0  ;;  %v1290_v17 = vand.u32 255, %v810_v6  ;;  %v1292_v18 = vand.u32 255, %v811_v7  ;;  %v1294_v19 = vand.u32 255, %v814_v8  ;;  %v1296_v20 = vand.u32 255, %v815_v9 }
  0x5d   : > { %244 = vst.msk [vmem:[%s1256_s26 + $0x20] sm:$0xff] %vm239_vm0, %v1064_v0  ;;  %245 = vst.msk [vmem:[%s1256_s26 + $0x28] sm:$0xff] %vm239_vm0, %v1064_v0  ;;  %v1300_v23 = vand.u32 255, %v818_v10  ;;  %v1302_v24 = vand.u32 255, %v819_v11  ;;  %v1304_v25 = vand.u32 255, %v822_v12  ;;  %v1306_v26 = vand.u32 255, %v823_v13 }
  0x5e   : > { %246 = vst.msk [vmem:[%s1256_s26 + $0x30] sm:$0xff] %vm239_vm0, %v1064_v0  ;;  %247 = vst.msk [vmem:[%s1256_s26 + $0x38] sm:$0xff] %vm239_vm0, %v1064_v0  ;;  %vm289_vm1 = vcmp.eq.s32.totalorder %v1285_v14, 1  ;;  %vm290_vm2 = vcmp.eq.s32.totalorder %v1287_v15, 1  ;;  %vm291_vm3 = vcmp.eq.s32.totalorder %v1290_v17, 1  ;;  %vm292_vm4 = vcmp.eq.s32.totalorder %v1292_v18, 1 }
  0x5f   : > { %248 = vst.msk [vmem:[%s1256_s26 + $0x40] sm:$0xff] %vm239_vm0, %v1064_v0  ;;  %v286_v31 = vld [vmem:[%s1243_s30 + $0x38] sm:$0xff]  ;;  %v287_v32 = vld [vmem:[%s1243_s30 + $0x40] sm:$0xff]  ;;  %vm293_vm5 = vcmp.eq.s32.totalorder %v1294_v19, 1  ;;  %vm294_vm6 = vcmp.eq.s32.totalorder %v1296_v20, 1  ;;  %vm295_vm7 = vcmp.eq.s32.totalorder %v1300_v23, 1 }
  0x60   : > { %vm296_vm8 = vcmp.eq.s32.totalorder %v1302_v24, 1  ;;  %v288_v33 = vld [vmem:[%s1243_s30 + $0x48] sm:$0xff]  ;;  %vm297_vm9 = vcmp.eq.s32.totalorder %v1304_v25, 1  ;;  %vm298_vm10 = vcmp.eq.s32.totalorder %v1306_v26, 1  ;;  %v299_v34 = vsel %vm289_vm1, %v279_v16, 0.0  ;;  %s642_s3 = sshll.u32 %s1256_s26, 4  ;;  %s1655_s3 = int_to_ptr.vmem [resolvable:$true] %s642_s3 }
  0x61   : > { %v300_v35 = vsel %vm290_vm2, %v280_v21, 0.0  ;;  %v301_v36 = vsel %vm291_vm3, %v281_v22, 0.0  ;;  %v302_v37 = vsel %vm292_vm4, %v282_v27, 0.0  ;;  %v303_v38 = vsel %vm293_vm5, %v283_v28, 0.0  ;;  %s970_s12 = scalar_lea.vmem %s1655_s3, 1152  ;;  %s1065_s18 = smov [#allocation7]  }
  0x62   : > { %v304_v39 = vsel %vm294_vm6, %v284_v29, 0.0  ;;  %v305_v40 = vsel %vm295_vm7, %v285_v30, 0.0  ;;  %v306_v41 = vsel %vm296_vm8, %v286_v31, 0.0  ;;  %v307_v42 = vsel %vm297_vm9, %v287_v32, 0.0  ;;  %p971_p0 = scmp.ne.s32.totalorder %s1655_s3, %s970_s12  ;;  %s974_s20 = sshll.u32 %s1065_s18, 4  ;;  %s975_s20 = int_to_ptr.vmem [resolvable:$false] %s974_s20 }
  0x63   : > { %v308_v43 = vsel %vm298_vm10, %v288_v33, 0.0  ;;  %v310_v44 = vsel %vm239_vm0, %v299_v34, 0.0  ;;  %v311_v45 = vsel %vm239_vm0, %v301_v36, 0.0  ;;  %v313_v46 = vsel %vm239_vm0, %v303_v38, 0.0  ;;  %s976_s5 = scalar_lea.vmem %s975_s20, 2304  ;;  %p977_p7 = scmp.lt.s32.totalorder %s1655_s3, %s975_s20 }
  0x64   : > { %v312_v47 = vadd.f32 %v311_v45, %v310_v44  ;;  %v315_v48 = vsel %vm239_vm0, %v305_v40, 0.0  ;;  %v319_v49 = vsel %vm239_vm0, %v300_v35, 0.0  ;;  %v320_v50 = vsel %vm239_vm0, %v302_v37, 0.0  ;;  %p972_p11 = pnand %p971_p0, %p1719_p3  ;;  %p978_p10 = scmp.lt.s32.totalorder %s976_s5, %s970_s12 }
  0x65   : > { %v317_v51 = vsel %vm239_vm0, %v307_v42, 0.0  ;;  %v321_v52 = vadd.f32 %v320_v50, %v319_v49  ;;  %v322_v53 = vsel %vm239_vm0, %v304_v39, 0.0  ;;  %v324_v54 = vsel %vm239_vm0, %v306_v41, 0.0 }
  0x66   : > { %v314_v55 = vadd.f32 %v313_v46, %v312_v47  ;;  %v334_v56 = vsel %vm239_vm0, %v279_v16, 0.0  ;;  %v335_v57 = vsel %vm239_vm0, %v281_v22, 0.0  ;;  %v337_v58 = vsel %vm239_vm0, %v283_v28, 0.0  ;;  %v765_v47 = vld [vmem:[%s1256_s26 + $0x18] sm:$0xff]  ;;  %p973_p13 = pneg %p972_p11  ;;  %p979_p12 = por %p978_p10, %p977_p7 }
  0x67   : > { %v323_v59 = vadd.f32 %v322_v53, %v321_v52  ;;  %v326_v60 = vsel %vm239_vm0, %v308_v43, 0.0  ;;  %v336_v61 = vadd.f32 %v335_v57, %v334_v56  ;;  %v339_v62 = vsel %vm239_vm0, %v285_v30, 0.0  ;;  %v328_v30 = vld [vmem:[%s1256_s26] sm:$0xff] }
  0x68   : > { %v316_v63 = vadd.f32 %v315_v48, %v314_v55  ;;  %v343_v1 = vsel %vm239_vm0, %v280_v21, 0.0  ;;  %v344_v2 = vsel %vm239_vm0, %v282_v27, 0.0  ;;  %v346_v3 = vsel %vm239_vm0, %v284_v29, 0.0  ;;  %p980_p9 = pnand %p979_p12, %p973_p13 }
  0x69   : > { %v325_v4 = vadd.f32 %v324_v54, %v323_v59  ;;  %v338_v5 = vadd.f32 %v337_v58, %v336_v61  ;;  %v341_v6 = vsel %vm239_vm0, %v287_v32, 0.0  ;;  %v345_v7 = vadd.f32 %v344_v2, %v343_v1  ;;  %v771_v1 = vld [vmem:[%s1243_s30 + $0x60] sm:$0xff]  ;;  %v772_v2 = vld [vmem:[%s1243_s30 + $0x68] sm:$0xff] }
  0x6a   : > { %v318_v8 = vadd.f32 %v317_v51, %v316_v63  ;;  %v348_v9 = vsel %vm239_vm0, %v286_v31, 0.0  ;;  %v350_v10 = vsel %vm239_vm0, %v288_v33, 0.0  ;;  %v359_v11 = vsel %vm289_vm1, 1.0, %v1064_v0  ;;  %v770_v63 = vld [vmem:[%s1243_s30 + $0x58] sm:$0xff] }
  0x6b   : > { %v327_v12 = vadd.f32 %v326_v60, %v325_v4  ;;  %v340_v13 = vadd.f32 %v339_v62, %v338_v5  ;;  %v347_v16 = vadd.f32 %v346_v3, %v345_v7  ;;  %v360_v21 = vsel %vm290_vm2, 1.0, %v1064_v0  ;;  %v769_v62 = vld [vmem:[%s1243_s30 + $0x50] sm:$0xff]  ;;  %v775_v7 = vld [vmem:[%s1243_s30 + $0x80] sm:$0xff] }
  0x6c   : > { %v329_v22 = vsel %vm239_vm0, %v318_v8, 0.0  ;;  %v361_v27 = vsel %vm291_vm3, 1.0, %v1064_v0  ;;  %v362_v28 = vsel %vm292_vm4, 1.0, %v1064_v0  ;;  %v363_v29 = vsel %vm293_vm5, 1.0, %v1064_v0  ;;  %v773_v3 = vld [vmem:[%s1243_s30 + $0x70] sm:$0xff]  ;;  %v776_v8 = vld [vmem:[%s1243_s30 + $0x88] sm:$0xff] }
  0x6d   : > { %v330_v31 = vsel %vm239_vm0, %v327_v12, 0.0  ;;  %v342_v32 = vadd.f32 %v341_v6, %v340_v13  ;;  %v349_v33 = vadd.f32 %v348_v9, %v347_v16  ;;  %v364_v34 = vsel %vm294_vm6, 1.0, %v1064_v0  ;;  %v774_v6 = vld [vmem:[%s1243_s30 + $0x78] sm:$0xff]  ;;  %v777_v9 = vld [vmem:[%s1243_s30 + $0x90] sm:$0xff] }
  0x6e   : > { %v331_v35 = vadd.f32 %v330_v31, %v329_v22  ;;  %v365_v36 = vsel %vm295_vm7, 1.0, %v1064_v0  ;;  %v366_v37 = vsel %vm296_vm8, 1.0, %v1064_v0  ;;  %v367_v38 = vsel %vm297_vm9, 1.0, %v1064_v0  ;;  %v778_v16 = vld [vmem:[%s1243_s30 + $0x98] sm:$0xff] }
  0x6f   : > { %v351_v39 = vadd.f32 %v350_v10, %v349_v33  ;;  %v354_v40 = vsel %vm239_vm0, %v342_v32, 0.0  ;;  %v369_v41 = vsel %vm239_vm0, %v359_v11, 0.0  ;;  %v370_v42 = vsel %vm239_vm0, %v361_v27, 0.0  ;;  %v767_v31 = vld [vmem:[%s1256_s26 + $0x30] sm:$0xff] }
  0x70   : > { %v332_v43 = vadd.f32 %v331_v35, %v328_v30  ;;  %v368_v44 = vsel %vm298_vm10, 1.0, %v1064_v0  ;;  %v371_v45 = vadd.f32 %v370_v42, %v369_v41  ;;  %v372_v46 = vsel %vm239_vm0, %v363_v29, 0.0 }
  0x71   : > { %v355_v48 = vsel %vm239_vm0, %v351_v39, 0.0  ;;  %v374_v49 = vsel %vm239_vm0, %v365_v36, 0.0  ;;  %v378_v50 = vsel %vm239_vm0, %v360_v21, 0.0  ;;  %v379_v51 = vsel %vm239_vm0, %v362_v28, 0.0 }
  0x72   : > { %333 = vst.msk [vmem:[%s1256_s26] sm:$0xff] %vm239_vm0, %v332_v43  ;;  %v356_v52 = vadd.f32 %v355_v48, %v354_v40  ;;  %v373_v53 = vadd.f32 %v372_v46, %v371_v45  ;;  %v380_v54 = vadd.f32 %v379_v51, %v378_v50  ;;  %v381_v55 = vsel %vm239_vm0, %v364_v34, 0.0 }
  0x73   : > { %v376_v56 = vsel %vm239_vm0, %v367_v38, 0.0  ;;  %v383_v57 = vsel %vm239_vm0, %v366_v37, 0.0  ;;  %v385_v58 = vsel %vm239_vm0, %v368_v44, 0.0  ;;  %vm405_vm11 = vcmp.eq.s32.totalorder %v1285_v14, 2 }
  0x74   : > { %v357_v59 = vadd.f32 %v765_v47, %v356_v52  ;;  %v375_v60 = vadd.f32 %v374_v49, %v373_v53  ;;  %v382_v61 = vadd.f32 %v381_v55, %v380_v54  ;;  %vm407_vm12 = vcmp.eq.s32.totalorder %v1290_v17, 2 }
  0x75   : > { %vm406_vm13 = vcmp.eq.s32.totalorder %v1287_v15, 2  ;;  %vm408_vm14 = vcmp.eq.s32.totalorder %v1292_v18, 2  ;;  %vm409_vm15 = vcmp.eq.s32.totalorder %v1294_v19, 2  ;;  %vm410_vm1 = vcmp.eq.s32.totalorder %v1296_v20, 2 }
  0x76   : > { %766 = vst.msk [vmem:[%s1256_s26 + $0x18] sm:$0xff] %vm239_vm0, %v357_v59  ;;  %v377_v4 = vadd.f32 %v376_v56, %v375_v60  ;;  %v384_v5 = vadd.f32 %v383_v57, %v382_v61  ;;  %vm411_vm2 = vcmp.eq.s32.totalorder %v1300_v23, 2  ;;  %vm412_vm3 = vcmp.eq.s32.totalorder %v1302_v24, 2 }
  0x77   : > { %vm413_vm4 = vcmp.eq.s32.totalorder %v1304_v25, 2  ;;  %vm414_vm5 = vcmp.eq.s32.totalorder %v1306_v26, 2  ;;  %v415_v10 = vsel %vm405_vm11, %v769_v62, 0.0  ;;  %v417_v11 = vsel %vm407_vm12, %v771_v1, 0.0 }
  0x78   : > { %v386_v12 = vadd.f32 %v385_v58, %v384_v5  ;;  %v389_v13 = vsel %vm239_vm0, %v377_v4, 0.0  ;;  %v416_v21 = vsel %vm406_vm13, %v770_v63, 0.0  ;;  %v419_v22 = vsel %vm409_vm15, %v773_v3, 0.0 }
  0x79   : > { %v418_v27 = vsel %vm408_vm14, %v772_v2, 0.0  ;;  %v420_v28 = vsel %vm410_vm1, %v774_v6, 0.0  ;;  %v421_v29 = vsel %vm411_vm2, %v775_v7, 0.0  ;;  %v422_v30 = vsel %vm412_vm3, %v776_v8, 0.0 }
  0x7a   : > { %v390_v32 = vsel %vm239_vm0, %v386_v12, 0.0  ;;  %v423_v33 = vsel %vm413_vm4, %v777_v9, 0.0  ;;  %v425_v34 = vsel %vm239_vm0, %v415_v10, 0.0  ;;  %v426_v35 = vsel %vm239_vm0, %v417_v11, 0.0 }
  0x7b   : > { %v391_v36 = vadd.f32 %v390_v32, %v389_v13  ;;  %v424_v37 = vsel %vm414_vm5, %v778_v16, 0.0  ;;  %v427_v38 = vadd.f32 %v426_v35, %v425_v34  ;;  %v428_v39 = vsel %vm239_vm0, %v419_v22, 0.0  ;;  %v779_v13 = vld [vmem:[%s1256_s26 + $0x8] sm:$0xff] }
  0x7c   : > { %v430_v40 = vsel %vm239_vm0, %v421_v29, 0.0  ;;  %v434_v41 = vsel %vm239_vm0, %v416_v21, 0.0  ;;  %v435_v42 = vsel %vm239_vm0, %v418_v27, 0.0  ;;  %v437_v43 = vsel %vm239_vm0, %v420_v28, 0.0 }
  0x7d   : > { %v392_v44 = vadd.f32 %v767_v31, %v391_v36  ;;  %v429_v45 = vadd.f32 %v428_v39, %v427_v38  ;;  %v432_v46 = vsel %vm239_vm0, %v423_v33, 0.0  ;;  %v436_v47 = vadd.f32 %v435_v42, %v434_v41 }
  0x7e   : > { %v439_v48 = vsel %vm239_vm0, %v422_v30, 0.0  ;;  %v450_v49 = vsel %vm239_vm0, %v769_v62, 0.0  ;;  %v451_v50 = vsel %vm239_vm0, %v771_v1, 0.0  ;;  %v453_v51 = vsel %vm239_vm0, %v773_v3, 0.0 }
  0x7f   : > { %768 = vst.msk [vmem:[%s1256_s26 + $0x30] sm:$0xff] %vm239_vm0, %v392_v44  ;;  %v431_v52 = vadd.f32 %v430_v40, %v429_v45  ;;  %v438_v53 = vadd.f32 %v437_v43, %v436_v47  ;;  %v441_v54 = vsel %vm239_vm0, %v424_v37, 0.0  ;;  %v452_v55 = vadd.f32 %v451_v50, %v450_v49  ;;  %v781_v40 = vld [vmem:[%s1256_s26 + $0x20] sm:$0xff] }
  0x80   : > { %v455_v56 = vsel %vm239_vm0, %v775_v7, 0.0  ;;  %v459_v57 = vsel %vm239_vm0, %v770_v63, 0.0  ;;  %v460_v58 = vsel %vm239_vm0, %v772_v2, 0.0  ;;  %v462_v59 = vsel %vm239_vm0, %v774_v6, 0.0 }
  0x81   : > { %v433_v60 = vadd.f32 %v432_v46, %v431_v52  ;;  %v440_v61 = vadd.f32 %v439_v48, %v438_v53  ;;  %v454_v62 = vadd.f32 %v453_v51, %v452_v55  ;;  %v461_v1 = vadd.f32 %v460_v58, %v459_v57  ;;  %v785_v55 = vld [vmem:[%s1243_s30 + $0xa0] sm:$0xff]  ;;  %v787_v57 = vld [vmem:[%s1243_s30 + $0xb0] sm:$0xff]  ;;  %v788_v58 = vld [vmem:[%s1243_s30 + $0xb8] sm:$0xff] }
  0x82   : > { %v457_v3 = vsel %vm239_vm0, %v777_v9, 0.0  ;;  %v464_v4 = vsel %vm239_vm0, %v776_v8, 0.0  ;;  %v466_v5 = vsel %vm239_vm0, %v778_v16, 0.0  ;;  %v475_v7 = vsel %vm405_vm11, 1.0, %v1064_v0 }
  0x83   : > { %v442_v63 = vadd.f32 %v441_v54, %v440_v61  ;;  %v445_v2 = vsel %vm239_vm0, %v433_v60, 0.0  ;;  %v456_v10 = vadd.f32 %v455_v56, %v454_v62  ;;  %v463_v6 = vadd.f32 %v462_v59, %v461_v1  ;;  %v786_v56 = vld [vmem:[%s1243_s30 + $0xa8] sm:$0xff]  ;;  %v789_v59 = vld [vmem:[%s1243_s30 + $0xc0] sm:$0xff]  ;;  %v791_v1 = vld [vmem:[%s1243_s30 + $0xd0] sm:$0xff] }
  0x84   : > { %v476_v11 = vsel %vm406_vm13, 1.0, %v1064_v0  ;;  %v477_v9 = vsel %vm407_vm12, 1.0, %v1064_v0  ;;  %v478_v8 = vsel %vm408_vm14, 1.0, %v1064_v0  ;;  %v479_v12 = vsel %vm409_vm15, 1.0, %v1064_v0  ;;  %v790_v62 = vld [vmem:[%s1243_s30 + $0xc8] sm:$0xff] }
  0x85   : > { %v446_v16 = vsel %vm239_vm0, %v442_v63, 0.0  ;;  %v458_v21 = vadd.f32 %v457_v3, %v456_v10  ;;  %v465_v22 = vadd.f32 %v464_v4, %v463_v6  ;;  %v480_v27 = vsel %vm410_vm1, 1.0, %v1064_v0  ;;  %v792_v3 = vld [vmem:[%s1243_s30 + $0xd8] sm:$0xff]  ;;  %v793_v4 = vld [vmem:[%s1243_s30 + $0xe0] sm:$0xff]  ;;  %v794_v10 = vld [vmem:[%s1243_s30 + $0xe8] sm:$0xff] }
  0x86   : > { %v447_v28 = vadd.f32 %v446_v16, %v445_v2  ;;  %v481_v29 = vsel %vm411_vm2, 1.0, %v1064_v0  ;;  %v482_v30 = vsel %vm412_vm3, 1.0, %v1064_v0  ;;  %v483_v31 = vsel %vm413_vm4, 1.0, %v1064_v0  ;;  %v783_v16 = vld [vmem:[%s1256_s26 + $0x38] sm:$0xff] }
  0x87   : > { %v467_v32 = vadd.f32 %v466_v5, %v465_v22  ;;  %v470_v33 = vsel %vm239_vm0, %v458_v21, 0.0  ;;  %v485_v34 = vsel %vm239_vm0, %v475_v7, 0.0  ;;  %v486_v35 = vsel %vm239_vm0, %v477_v9, 0.0 }
  0x88   : > { %v448_v36 = vadd.f32 %v779_v13, %v447_v28  ;;  %v484_v37 = vsel %vm414_vm5, 1.0, %v1064_v0  ;;  %v487_v38 = vadd.f32 %v486_v35, %v485_v34  ;;  %v488_v39 = vsel %vm239_vm0, %v479_v12, 0.0 }
  0x89   : > { %v471_v41 = vsel %vm239_vm0, %v467_v32, 0.0  ;;  %v490_v42 = vsel %vm239_vm0, %v481_v29, 0.0  ;;  %v494_v43 = vsel %vm239_vm0, %v476_v11, 0.0  ;;  %v495_v44 = vsel %vm239_vm0, %v478_v8, 0.0 }
  0x8a   : > { %780 = vst.msk [vmem:[%s1256_s26 + $0x8] sm:$0xff] %vm239_vm0, %v448_v36  ;;  %v472_v45 = vadd.f32 %v471_v41, %v470_v33  ;;  %v489_v46 = vadd.f32 %v488_v39, %v487_v38  ;;  %v496_v47 = vadd.f32 %v495_v44, %v494_v43  ;;  %v497_v48 = vsel %vm239_vm0, %v480_v27, 0.0 }
  0x8b   : > { %v492_v49 = vsel %vm239_vm0, %v483_v31, 0.0  ;;  %v499_v50 = vsel %vm239_vm0, %v482_v30, 0.0  ;;  %v501_v51 = vsel %vm239_vm0, %v484_v37, 0.0  ;;  %vm521_vm6 = vcmp.eq.s32.totalorder %v1285_v14, 3 }
  0x8c   : > { %v473_v52 = vadd.f32 %v781_v40, %v472_v45  ;;  %v491_v53 = vadd.f32 %v490_v42, %v489_v46  ;;  %v498_v54 = vadd.f32 %v497_v48, %v496_v47  ;;  %vm523_vm7 = vcmp.eq.s32.totalorder %v1290_v17, 3 }
  0x8d   : > { %vm522_vm8 = vcmp.eq.s32.totalorder %v1287_v15, 3  ;;  %vm524_vm9 = vcmp.eq.s32.totalorder %v1292_v18, 3  ;;  %vm525_vm10 = vcmp.eq.s32.totalorder %v1294_v19, 3  ;;  %vm526_vm11 = vcmp.eq.s32.totalorder %v1296_v20, 3 }
  0x8e   : > { %782 = vst.msk [vmem:[%s1256_s26 + $0x20] sm:$0xff] %vm239_vm0, %v473_v52  ;;  %v493_v60 = vadd.f32 %v492_v49, %v491_v53  ;;  %v500_v61 = vadd.f32 %v499_v50, %v498_v54  ;;  %vm527_vm12 = vcmp.eq.s32.totalorder %v1300_v23, 3  ;;  %vm528_vm13 = vcmp.eq.s32.totalorder %v1302_v24, 3 }
  0x8f   : > { %vm529_vm14 = vcmp.eq.s32.totalorder %v1304_v25, 3  ;;  %vm530_vm15 = vcmp.eq.s32.totalorder %v1306_v26, 3  ;;  %v531_v5 = vsel %vm521_vm6, %v785_v55, 0.0  ;;  %v533_v7 = vsel %vm523_vm7, %v787_v57, 0.0 }
  0x90   : > { %v502_v63 = vadd.f32 %v501_v51, %v500_v61  ;;  %v505_v2 = vsel %vm239_vm0, %v493_v60, 0.0  ;;  %v532_v6 = vsel %vm522_vm8, %v786_v56, 0.0  ;;  %v535_v11 = vsel %vm525_vm10, %v789_v59, 0.0 }
  0x91   : > { %v534_v9 = vsel %vm524_vm9, %v788_v58, 0.0  ;;  %v536_v8 = vsel %vm526_vm11, %v790_v62, 0.0  ;;  %v537_v12 = vsel %vm527_vm12, %v791_v1, 0.0  ;;  %v538_v13 = vsel %vm528_vm13, %v792_v3, 0.0 }
  0x92   : > { %v506_v21 = vsel %vm239_vm0, %v502_v63, 0.0  ;;  %v539_v22 = vsel %vm529_vm14, %v793_v4, 0.0  ;;  %v541_v27 = vsel %vm239_vm0, %v531_v5, 0.0  ;;  %v542_v28 = vsel %vm239_vm0, %v533_v7, 0.0  ;;  %v795_v63 = vld [vmem:[%s1256_s26 + $0x10] sm:$0xff] }
  0x93   : > { %v507_v29 = vadd.f32 %v506_v21, %v505_v2  ;;  %v540_v30 = vsel %vm530_vm15, %v794_v10, 0.0  ;;  %v543_v31 = vadd.f32 %v542_v28, %v541_v27  ;;  %v544_v32 = vsel %vm239_vm0, %v535_v11, 0.0  ;;  %v797_v21 = vld [vmem:[%s1256_s26 + $0x28] sm:$0xff] }
  0x94   : > { %v546_v33 = vsel %vm239_vm0, %v537_v12, 0.0  ;;  %v550_v34 = vsel %vm239_vm0, %v532_v6, 0.0  ;;  %v551_v35 = vsel %vm239_vm0, %v534_v9, 0.0  ;;  %v553_v36 = vsel %vm239_vm0, %v536_v8, 0.0 }
  0x95   : > { %v508_v37 = vadd.f32 %v783_v16, %v507_v29  ;;  %v545_v38 = vadd.f32 %v544_v32, %v543_v31  ;;  %v548_v39 = vsel %vm239_vm0, %v539_v22, 0.0  ;;  %v552_v40 = vadd.f32 %v551_v35, %v550_v34 }
  0x96   : > { %v555_v41 = vsel %vm239_vm0, %v538_v13, 0.0  ;;  %v566_v42 = vsel %vm239_vm0, %v785_v55, 0.0  ;;  %v567_v43 = vsel %vm239_vm0, %v787_v57, 0.0  ;;  %v569_v44 = vsel %vm239_vm0, %v789_v59, 0.0 }
  0x97   : > { %784 = vst.msk [vmem:[%s1256_s26 + $0x38] sm:$0xff] %vm239_vm0, %v508_v37  ;;  %v547_v45 = vadd.f32 %v546_v33, %v545_v38  ;;  %v554_v46 = vadd.f32 %v553_v36, %v552_v40  ;;  %v557_v47 = vsel %vm239_vm0, %v540_v30, 0.0  ;;  %v568_v48 = vadd.f32 %v567_v43, %v566_v42 }
  0x98   : > { %v571_v49 = vsel %vm239_vm0, %v791_v1, 0.0  ;;  %v575_v50 = vsel %vm239_vm0, %v786_v56, 0.0  ;;  %v576_v51 = vsel %vm239_vm0, %v788_v58, 0.0  ;;  %v578_v52 = vsel %vm239_vm0, %v790_v62, 0.0 }
  0x99   : > { %v549_v53 = vadd.f32 %v548_v39, %v547_v45  ;;  %v556_v54 = vadd.f32 %v555_v41, %v554_v46  ;;  %v570_v55 = vadd.f32 %v569_v44, %v568_v48  ;;  %v577_v57 = vadd.f32 %v576_v51, %v575_v50  ;;  %v799_v41 = vld [vmem:[%s1256_s26 + $0x40] sm:$0xff] }
  0x9a   : > { %v573_v59 = vsel %vm239_vm0, %v793_v4, 0.0  ;;  %v580_v60 = vsel %vm239_vm0, %v792_v3, 0.0  ;;  %v582_v61 = vsel %vm239_vm0, %v794_v10, 0.0  ;;  %v591_v1 = vsel %vm521_vm6, 1.0, %v1064_v0 }
  0x9b   : > { %v558_v56 = vadd.f32 %v557_v47, %v556_v54  ;;  %v561_v58 = vsel %vm239_vm0, %v549_v53, 0.0  ;;  %v572_v5 = vadd.f32 %v571_v49, %v570_v55  ;;  %v579_v62 = vadd.f32 %v578_v52, %v577_v57 }
  0x9c   : > { %v592_v7 = vsel %vm522_vm8, 1.0, %v1064_v0  ;;  %v593_v4 = vsel %vm523_vm7, 1.0, %v1064_v0  ;;  %v594_v3 = vsel %vm524_vm9, 1.0, %v1064_v0  ;;  %v595_v14 = vsel %vm525_vm10, 1.0, %v1064_v0 }
  0x9d   : > { %v562_v2 = vsel %vm239_vm0, %v558_v56, 0.0  ;;  %v574_v10 = vadd.f32 %v573_v59, %v572_v5  ;;  %v581_v6 = vadd.f32 %v580_v60, %v579_v62  ;;  %v596_v15 = vsel %vm526_vm11, 1.0, %v1064_v0 }
  0x9e   : > { %v563_v17 = vadd.f32 %v562_v2, %v561_v58  ;;  %v597_v18 = vsel %vm527_vm12, 1.0, %v1064_v0  ;;  %v598_v19 = vsel %vm528_vm13, 1.0, %v1064_v0  ;;  %v599_v11 = vsel %vm529_vm14, 1.0, %v1064_v0 }
  0x9f   : > { %v583_v9 = vadd.f32 %v582_v61, %v581_v6  ;;  %v586_v8 = vsel %vm239_vm0, %v574_v10, 0.0  ;;  %v601_v20 = vsel %vm239_vm0, %v591_v1, 0.0  ;;  %v602_v12 = vsel %vm239_vm0, %v593_v4, 0.0 }
  0xa0   : > { %v564_v13 = vadd.f32 %v795_v63, %v563_v17  ;;  %v600_v23 = vsel %vm530_vm15, 1.0, %v1064_v0  ;;  %v603_v16 = vadd.f32 %v602_v12, %v601_v20  ;;  %v604_v24 = vsel %vm239_vm0, %v595_v14, 0.0 }
  0xa1   : > { %v587_v25 = vsel %vm239_vm0, %v583_v9, 0.0  ;;  %v606_v22 = vsel %vm239_vm0, %v597_v18, 0.0  ;;  %v610_v27 = vsel %vm239_vm0, %v592_v7, 0.0  ;;  %v611_v28 = vsel %vm239_vm0, %v594_v3, 0.0 }
  0xa2   : > { %796 = vst.msk [vmem:[%s1256_s26 + $0x10] sm:$0xff] %vm239_vm0, %v564_v13  ;;  %v588_v29 = vadd.f32 %v587_v25, %v586_v8  ;;  %v605_v26 = vadd.f32 %v604_v24, %v603_v16  ;;  %v612_v0 = vadd.f32 %v611_v28, %v610_v27  ;;  %v613_v30 = vsel %vm239_vm0, %v596_v15, 0.0 }
  0xa3   : > { %v608_v31 = vsel %vm239_vm0, %v599_v11, 0.0  ;;  %v615_v32 = vsel %vm239_vm0, %v598_v19, 0.0  ;;  %v617_v36 = vsel %vm239_vm0, %v600_v23, 0.0 }
  0xa4   : > { %v589_v33 = vadd.f32 %v797_v21, %v588_v29  ;;  %v607_v34 = vadd.f32 %v606_v22, %v605_v26  ;;  %v614_v35 = vadd.f32 %v613_v30, %v612_v0 }
  0xa6   : > { %798 = vst.msk [vmem:[%s1256_s26 + $0x28] sm:$0xff] %vm239_vm0, %v589_v33  ;;  %v609_v37 = vadd.f32 %v608_v31, %v607_v34  ;;  %v616_v38 = vadd.f32 %v615_v32, %v614_v35 }
  0xa8   : > { %v618_v39 = vadd.f32 %v617_v36, %v616_v38  ;;  %v621_v40 = vsel %vm239_vm0, %v609_v37, 0.0 }
  0xaa   : > { %v622_v42 = vsel %vm239_vm0, %v618_v39, 0.0 }
  0xab   : > { %v623_v43 = vadd.f32 %v622_v42, %v621_v40 }
  0xad   : > { %v624_v44 = vadd.f32 %v799_v41, %v623_v43 }
  0xaf   : > { %800 = vst.msk [vmem:[%s1256_s26 + $0x40] sm:$0xff] %vm239_vm0, %v624_v44 }
  0xb0   : > { %983 = shalt.err (!%p980_p9)
}
  0xb1   : > { %s984_s27 = scalar_lea.hbm %s1653_s15, 1152  ;;  %s988_s25 = scalar_lea.hbm %s1708_s2, 2304 }
  0xb2   : > { %p985_p1 = scmp.ne.s32.totalorder %s1653_s15, %s984_s27  ;;  %p989_p4 = scmp.lt.u32.totalorder %s1653_s15, %s1708_s2 }
  0xb3   : > { %p990_p6 = scmp.lt.u32.totalorder %s988_s25, %s984_s27  ;;  %p992_p0 = scmp.lt.u32.totalorder %s984_s27, %s1653_s15 }
  0xb4   : > { %p986_p5 = pnand %p985_p1, %p1719_p3 }
  0xb5   : > { %p991_p8 = por %p990_p6, %p989_p4 }
  0xb6   : > { %p987_p2 = pneg %p986_p5 }
  0xb7   : > { %p993_p11 = por %p992_p0, %p991_p8 }
  0xb9   : > { %p994_p13 = pnand %p993_p11, %p987_p2 }
  0xbb   : > { %997 = shalt.err (!%p994_p13)
}
  0xbc   : > { %s1066_s19 = smov 128   ;;  %s1067_s26 = smov 8  }
  0xbd   : > { %840 = dma.vmem_to_hbm [thread:$0]  (%p1719_p3), %s1655_s3, 1152, %s1653_s15, %s627_s16, %s1066_s19, %s1066_s19, %s1067_s26  }
  0xbe PF: > { %s657_s21 = sand.u32 1, %s1036_s9   ;;  %p1720_p7 = scmp.ne.s32.totalorder %s1714_s24, 0 }
  0xbf   : > { %p1721_p10 = scmp.ge.s32.totalorder %s1056_s14, 2  ;;  %s658_s4 = scalar_lea.sflag [#allocation4], %s657_s21 }
  0xc1   : > { %p850_p12 = pnand %p1721_p10, %p1720_p7 }
  0xc3   : > { %1031 = dma.done.wait (!%p850_p12), %s658_s4, 1152  }
  0xc4   : > { %1033 = vsyncadd (!%p850_p12), %s658_s4, 4294966144  ;;  %s21_s14 = sadd.s32 1, %s1056_s14   ;;  %s1722_s9 = smov %s1040_s10 }
  0xc5   : > { %p18_p9 = scmp.ge.s32.totalorder %s21_s14, 4   ;;  %s1723_s10 = smov %s1044_s11 }
  0xc6   : > { %s1724_s11 = smov %s1139_s23  ;;  %s1725_s12 = smov %s1052_s13 }
  0xc7   : > { %s1726_s13 = smov %s1728_s17  ;;  %20 = sbr.rel (!%p18_p9) target bundleno = 8 (0x8), region = 100 }
  0xce   :  { %663 = vsyncpa [#allocation3], 1 }
  0xcf   :  { %665 = vsyncpa [#allocation3 + $0x1], 1 }
  0xd0   :  { %666 = vsyncpa [#allocation6], 1 }
  0xd1   :  { %668 = vsyncpa [#allocation6 + $0x1], 1 }
  0xd2   :  { %669 = vsyncpa [#allocation4], 1 }
  0xd3   :  { %671 = vsyncpa [#allocation4 + $0x1], 1 }

</bundles_post_ra>
